<compile_context>
chip_gen: v5e
topology: v5e:2x2
jax: 0.10.0
libtpu: 0.0.40
codegen_flags: <defaults>
</compile_context>

<pallas_src>
import jax
import jax.numpy as jnp
from jax.experimental import pallas as pl
from jax.experimental.pallas import tpu as pltpu

_LANE = 128
_MAX_TILE_N = 32768          # lanes per grid step; fits v5e/v6e/v7x VMEM budgets
_SPLIT_THRESHOLD_N = 1 << 18  # only split across 2 TCs when there is real work


def _make_mpjpe_kernel(*, tile_n, steps_per_split, n_valid, use_weight, ragged):
    """Kernel closing over static tile width, split size, valid count, flags."""
    inv_n = 1.0 / float(n_valid)

    def kernel(*refs):
        if use_weight:
            o_ref, t_ref, w_ref, out_ref, acc_ref = refs
        else:
            o_ref, t_ref, out_ref, acc_ref = refs

        c = pl.program_id(0)   # core-split axis ("parallel")
        k = pl.program_id(1)   # reduction axis   ("arbitrary")

        @pl.when(k == 0)
        def _():
            acc_ref[...] = jnp.zeros_like(acc_ref)

        o = o_ref[...].astype(jnp.float32)           # (D, tile_n)
        t = t_ref[...].astype(jnp.float32)           # (D, tile_n)
        d = o - t
        if use_weight:
            d = d * w_ref[...].astype(jnp.float32)   # (1, tile_n) bcast over sublanes

        # D rides the sublane axis -> cheap sublane reduction, no cross-lane work.
        sq = jnp.sum(d * d, axis=0, keepdims=True)   # (1, tile_n)
        dist = jnp.sqrt(sq + 1e-15)

        if ragged:
            # Out-of-range lanes of ragged / duplicated blocks hold unspecified
            # data; the select discards them (keep this mask: wrapper never pads).
            col = (jax.lax.broadcasted_iota(jnp.int32, (1, tile_n), 1)
                   + (c * steps_per_split + k) * tile_n)
            dist = jnp.where(col < n_valid, dist, 0.0)

        # Lane-wide partial accumulation: one vadd per vreg, no per-step reduce.
        acc_ref[...] += dist

        @pl.when(k == pl.num_programs(1) - 1)
        def _():
            total = jnp.sum(acc_ref[...], axis=1, keepdims=True) * inv_n  # (1,1)
            out_ref[...] = total[None].astype(out_ref.dtype)              # (1,1,1)

    return kernel


def mpjpe_loss(output, target, target_weight=None, use_target_weight=True):
    """Pallas implementation of MPJPELoss.forward. Returns shape (1,) float32."""
    B, J, D = output.shape
    N = B * J

    # Lane-dense tile width: multiple of 128, capped at 32768.
    tile_n = min(_MAX_TILE_N, ((N + _LANE - 1) // _LANE) * _LANE)
    total_steps = pl.cdiv(N, tile_n)

    # v7x: shard the reduction over the 2 TensorCores for large inputs only.
    n_splits = 2 if (N >= _SPLIT_THRESHOLD_N and total_steps >= 2) else 1
    steps_per_split = pl.cdiv(total_steps, n_splits)
    ragged = (n_splits * steps_per_split * tile_n) != N

    # Layout plumbing: (B, J, D) -> (D, B*J) so B*J rides the 128-wide lane axis.
    # No padding, no upcast.
    o = jnp.transpose(output.reshape(N, D))   # (D, N)
    t = jnp.transpose(target.reshape(N, D))   # (D, N)

    last_block = total_steps - 1

    def nd_map(c, k):
        # Clamp so a padded step of split 1 never issues an OOB DMA; its lanes are
        # past N so the in-kernel mask zeroes any duplicated contribution.
        idx = c * steps_per_split + k
        return (0, jnp.minimum(idx, last_block))

    in_specs = [
        pl.BlockSpec((D, tile_n), nd_map),
        pl.BlockSpec((D, tile_n), nd_map),
    ]
    args = [o, t]

    if use_target_weight:
        w = jnp.reshape(target_weight, (1, N))        # per-(b, j) scalar weight
        in_specs.append(pl.BlockSpec((1, tile_n), nd_map))
        args.append(w)
    # else: no ones tensor, no extra DMA traffic.

    kernel = _make_mpjpe_kernel(
        tile_n=tile_n, steps_per_split=steps_per_split, n_valid=N,
        use_weight=use_target_weight, ragged=ragged)

    partials = pl.pallas_call(
        kernel,
        out_shape=jax.ShapeDtypeStruct((n_splits, 1, 1), jnp.float32),
        grid_spec=pltpu.PrefetchScalarGridSpec(
            num_scalar_prefetch=0,
            grid=(n_splits, steps_per_split),
            in_specs=in_specs,
            out_specs=pl.BlockSpec((1, 1, 1), lambda c, k: (c, 0, 0)),
            scratch_shapes=[pltpu.VMEM((1, tile_n), jnp.float32)],
        ),
        compiler_params=pltpu.CompilerParams(
            dimension_semantics=("parallel", "arbitrary"),
        ),
    )(*args)

    # Each split already applied the 1/N scale; the cross-split sum is 1-2 elems.
    return jnp.sum(partials).reshape(1)  # matches torch.zeros(1)-shaped return


if __name__ == "__main__":
    key = jax.random.PRNGKey(0)
    k1, k2, k3 = jax.random.split(key, 3)

    B, J, D = 2, 8, 3  # batch, joints, coordinate dims
    output = jax.random.normal(k1, (B, J, D), dtype=jnp.float32)
    target = jax.random.normal(k2, (B, J, D), dtype=jnp.float32)
    target_weight = jax.random.uniform(k3, (B, J, 1), dtype=jnp.float32)

    # Weighted path.
    loss_w = jax.block_until_ready(mpjpe_loss(output, target, target_weight, True))
    dw = (output - target) * target_weight
    ref_w = jnp.mean(jnp.sqrt(jnp.sum(dw * dw, axis=-1) + 1e-15)).reshape(1)
    assert jnp.allclose(loss_w, ref_w, rtol=1e-5, atol=1e-6), (loss_w, ref_w)

    # Unweighted path (no ones tensor, no weight DMA).
    loss_u = jax.block_until_ready(mpjpe_loss(output, target, None, False))
    du = output - target
    ref_u = jnp.mean(jnp.sqrt(jnp.sum(du * du, axis=-1) + 1e-15)).reshape(1)
    assert jnp.allclose(loss_u, ref_u, rtol=1e-5, atol=1e-6), (loss_u, ref_u)

    print("KERNEL_OK")
</pallas_src>

<mosaic_0001>
module attributes {stable_mosaic.version = 11 : i64} {
  func.func @kernel(%arg0: i32, %arg1: i32, %arg2: memref<3x128xf32, #tpu.memory_space<vmem>>, %arg3: memref<3x128xf32, #tpu.memory_space<vmem>>, %arg4: memref<1x128xf32, #tpu.memory_space<vmem>>, %arg5: memref<1x1x1xf32, #tpu.memory_space<vmem>>, %arg6: memref<1x128xf32, #tpu.memory_space<vmem>>) attributes {dimension_semantics = [#tpu.dimension_semantics<parallel>, #tpu.dimension_semantics<arbitrary>], iteration_bounds = array<i64: 1, 1>, scalar_prefetch = 0 : i64, scratch_operands = 1 : i64, tpu.core_type = #tpu.core_type<tc>, window_params = [{transform_indices = @transform_0, window_bounds = array<i64: 3, 128>}, {transform_indices = @transform_1, window_bounds = array<i64: 3, 128>}, {transform_indices = @transform_2, window_bounds = array<i64: 1, 128>}, {transform_indices = @transform_3, window_bounds = array<i64: 1, 1, 1>}]} {
    %c0_i32 = arith.constant 0 : i32
    %0 = arith.cmpi eq, %arg1, %c0_i32 : i32
    %1 = arith.extui %0 : i1 to i32
    %c0_i32_0 = arith.constant 0 : i32
    %2 = arith.cmpi ne, %1, %c0_i32_0 : i32
    scf.if %2 {
      %cst_14 = arith.constant 0.000000e+00 : f32
      %31 = vector.broadcast %cst_14 : f32 to vector<1x128xf32>
      %c0_15 = arith.constant 0 : index
      %c0_16 = arith.constant 0 : index
      %32 = vector.load %arg6[%c0_15, %c0_16] : memref<1x128xf32, #tpu.memory_space<vmem>>, vector<1x128xf32>
      tpu.vector_store %arg6[%c0_15, %c0_16], %31 {strides = array<i32>} : memref<1x128xf32, #tpu.memory_space<vmem>>, vector<1x128xf32>,
    } else {
    }
    %c0 = arith.constant 0 : index
    %c0_1 = arith.constant 0 : index
    %3 = vector.load %arg2[%c0, %c0_1] : memref<3x128xf32, #tpu.memory_space<vmem>>, vector<3x128xf32>
    %c0_2 = arith.constant 0 : index
    %c0_3 = arith.constant 0 : index
    %4 = vector.load %arg3[%c0_2, %c0_3] : memref<3x128xf32, #tpu.memory_space<vmem>>, vector<3x128xf32>
    %5 = arith.subf %3, %4 : vector<3x128xf32>
    %c0_4 = arith.constant 0 : index
    %c0_5 = arith.constant 0 : index
    %6 = vector.load %arg4[%c0_4, %c0_5] : memref<1x128xf32, #tpu.memory_space<vmem>>, vector<1x128xf32>
    %7 = vector.broadcast %6 : vector<1x128xf32> to vector<3x128xf32>
    %8 = arith.mulf %5, %7 : vector<3x128xf32>
    %9 = arith.mulf %8, %8 : vector<3x128xf32>
    %cst = arith.constant dense<0.000000e+00> : vector<128xf32>
    %10 = vector.multi_reduction <add>, %9, %cst [0] : vector<3x128xf32> to vector<128xf32>
    %11 = vector.shape_cast %10 : vector<128xf32> to vector<1x128xf32>
    %cst_6 = arith.constant 1.000000e-15 : f32
    %12 = vector.broadcast %cst_6 : f32 to vector<1x128xf32>
    %13 = arith.addf %11, %12 : vector<1x128xf32>
    %14 = math.sqrt %13 : vector<1x128xf32>
    %15 = tpu.iota {dimensions = array<i32: 1>} : vector<1x128xi32>
    %c1_i32 = arith.constant 1 : i32
    %16 = arith.muli %arg0, %c1_i32 : i32
    %17 = arith.addi %16, %arg1 : i32
    %c128_i32 = arith.constant 128 : i32
    %18 = arith.muli %17, %c128_i32 : i32
    %19 = vector.broadcast %18 : i32 to vector<1x128xi32>
    %20 = arith.addi %15, %19 : vector<1x128xi32>
    %c16_i32 = arith.constant 16 : i32
    %21 = vector.broadcast %c16_i32 : i32 to vector<1x128xi32>
    %22 = arith.cmpi slt, %20, %21 : vector<1x128xi32>
    %cst_7 = arith.constant 0.000000e+00 : f32
    %23 = vector.broadcast %cst_7 : f32 to vector<1x128xf32>
    %24 = arith.select %22, %14, %23 : vector<1x128xi1>, vector<1x128xf32>
    %c0_8 = arith.constant 0 : index
    %c0_9 = arith.constant 0 : index
    %25 = vector.load %arg6[%c0_8, %c0_9] : memref<1x128xf32, #tpu.memory_space<vmem>>, vector<1x128xf32>
    %26 = arith.addf %25, %24 : vector<1x128xf32>
    %c0_10 = arith.constant 0 : index
    %c0_11 = arith.constant 0 : index
    %27 = vector.load %arg6[%c0_10, %c0_11] : memref<1x128xf32, #tpu.memory_space<vmem>>, vector<1x128xf32>
    tpu.vector_store %arg6[%c0_10, %c0_11], %26 {strides = array<i32>} : memref<1x128xf32, #tpu.memory_space<vmem>>, vector<1x128xf32>,
    %c0_i32_12 = arith.constant 0 : i32
    %28 = arith.cmpi eq, %arg1, %c0_i32_12 : i32
    %29 = arith.extui %28 : i1 to i32
    %c0_i32_13 = arith.constant 0 : i32
    %30 = arith.cmpi ne, %29, %c0_i32_13 : i32
    scf.if %30 {
      %c0_14 = arith.constant 0 : index
      %c0_15 = arith.constant 0 : index
      %31 = vector.load %arg6[%c0_14, %c0_15] : memref<1x128xf32, #tpu.memory_space<vmem>>, vector<1x128xf32>
      %cst_16 = arith.constant dense<0.000000e+00> : vector<1xf32>
      %32 = vector.multi_reduction <add>, %31, %cst_16 [1] : vector<1x128xf32> to vector<1xf32>
      %33 = vector.shape_cast %32 : vector<1xf32> to vector<1x1xf32>
      %cst_17 = arith.constant 6.250000e-02 : f32
      %34 = vector.broadcast %cst_17 : f32 to vector<1x1xf32>
      %35 = arith.mulf %33, %34 : vector<1x1xf32>
      %36 = vector.shape_cast %35 : vector<1x1xf32> to vector<1x1x1xf32>
      %c0_18 = arith.constant 0 : index
      %c0_19 = arith.constant 0 : index
      %c0_20 = arith.constant 0 : index
      %37 = vector.load %arg5[%c0_18, %c0_19, %c0_20] : memref<1x1x1xf32, #tpu.memory_space<vmem>>, vector<1x1x1xf32>
      tpu.vector_store %arg5[%c0_18, %c0_19, %c0_20], %36 {strides = array<i32>} : memref<1x1x1xf32, #tpu.memory_space<vmem>>, vector<1x1x1xf32>,
    } else {
    }
    return
  }
  func.func @transform_0(%arg0: i32, %arg1: i32) -> (i32, i32) {
    %c1_i32 = arith.constant 1 : i32
    %0 = arith.muli %arg0, %c1_i32 : i32
    %1 = arith.addi %0, %arg1 : i32
    %c0_i32 = arith.constant 0 : i32
    %2 = arith.minsi %1, %c0_i32 : i32
    %c0_i32_0 = arith.constant 0 : i32
    %c0_i32_1 = arith.constant 0 : i32
    return %c0_i32_0, %2 : i32, i32
  }
  func.func @transform_1(%arg0: i32, %arg1: i32) -> (i32, i32) {
    %c1_i32 = arith.constant 1 : i32
    %0 = arith.muli %arg0, %c1_i32 : i32
    %1 = arith.addi %0, %arg1 : i32
    %c0_i32 = arith.constant 0 : i32
    %2 = arith.minsi %1, %c0_i32 : i32
    %c0_i32_0 = arith.constant 0 : i32
    %c0_i32_1 = arith.constant 0 : i32
    return %c0_i32_0, %2 : i32, i32
  }
  func.func @transform_2(%arg0: i32, %arg1: i32) -> (i32, i32) {
    %c1_i32 = arith.constant 1 : i32
    %0 = arith.muli %arg0, %c1_i32 : i32
    %1 = arith.addi %0, %arg1 : i32
    %c0_i32 = arith.constant 0 : i32
    %2 = arith.minsi %1, %c0_i32 : i32
    %c0_i32_0 = arith.constant 0 : i32
    %c0_i32_1 = arith.constant 0 : i32
    return %c0_i32_0, %2 : i32, i32
  }
  func.func @transform_3(%arg0: i32, %arg1: i32) -> (i32, i32, i32) {
    %c0_i32 = arith.constant 0 : i32
    %c0_i32_0 = arith.constant 0 : i32
    %c0_i32_1 = arith.constant 0 : i32
    return %arg0, %c0_i32, %c0_i32_0 : i32, i32, i32
  }
}

</mosaic_0001>

<bundles_post_ra>
// kernel: tpu_custom_call.1
= control target key start
LH: loop header
LB: loop body
LE: loop exit
PB: predicated region body
PF: predicated region fallthrough
CT: control target
= control target key end

     0   :  { %8 = vsyncpa [#allocation4], 0  ;;  %s286_s0 = inlined_call_operand.hbm [shape: f32[3,16], index: 0, kind: input, shape index: {}]   ;;  %s287_s1 = inlined_call_operand.hbm [shape: f32[3,16], index: 1, kind: input, shape index: {}]   ;;  %s288_s2 = inlined_call_operand.vmem [shape: f32[1,16], index: 2, kind: input, shape index: {}]   ;;  %s289_s3 = inlined_call_operand.hbm [shape: f32[1,1,1], index: 3, kind: output, shape index: {}]  }
   0x1   :  { %9 = vsyncpa [#allocation7], 0 }
   0x2   :  { %10 = vsyncpa [#allocation5], 0  ;;  %s21_s14 = sshll.u32 %s286_s0, 4  ;;  %s250_s15 = smov [#allocation3]   ;;  %s22_s14 = int_to_ptr.hbm [resolvable:$true] %s21_s14 }
   0x3   :  { %s23_s16 = sshll.u32 %s250_s15, 4  ;;  %s37_s19 = sshll.u32 %s287_s1, 4  ;;  %s24_s16 = int_to_ptr.vmem [resolvable:$true] %s23_s16  ;;  %s38_s19 = int_to_ptr.hbm [resolvable:$true] %s37_s19 }
   0x4   :  { %26 = dma.hbm_to_vmem [thread:$0]  %s22_s14, 64, %s24_s16, [#allocation4]  }
   0x5   :  { %s251_s20 = smov [#allocation6]  }
   0x6   :  { %s39_s21 = sshll.u32 %s251_s20, 4  ;;  %s40_s21 = int_to_ptr.vmem [resolvable:$true] %s39_s21 }
   0x7   :  { %42 = dma.hbm_to_vmem [thread:$0]  %s38_s19, 64, %s40_s21, [#allocation7]  }
   0x8   :  { %244 = dma.done.wait [#allocation4], 64  }
   0x9   :  { %245 = vsyncadd [#allocation4], 4294967232 }
   0xa   :  { %246 = dma.done.wait [#allocation7], 64  }
   0xb   :  { %247 = vsyncadd [#allocation7], 4294967232  ;;  %v252_v0 = vmov 0.0   ;;  %v88_v1 = vld [vmem:[#allocation3] sm:$0x7]  ;;  %vm97_vm0 = vcmask 1042432   ;;  %v118_v18 = vlaneseq }
   0xc   :  { %87 = vst [vmem:[#allocation2] sm:$0x1] %v252_v0  ;;  %v89_v2 = vld [vmem:[#allocation6] sm:$0x7]  ;;  %v169_v4 = vld [vmem:[%s288_s2] ss:$0 sm:$0xff] }
   0xd   :  { %v90_v3 = vsub.f32 %v88_v1, %v89_v2  ;;  %v119_v21 = vand.u32 127, %v118_v18  ;;  %vm133_vm4 = vcmask 1040384   ;;  %s253_s1 = smov [#allocation8]   ;;  %s147_s25 = sshll.u32 %s289_s3, 4  ;;  %vm138_vm5 = vcmask 0   ;;  %s148_s25 = int_to_ptr.hbm [resolvable:$true] %s147_s25 }
   0xe   :  { %s145_s2 = sshll.u32 %s253_s1, 4  ;;  %s146_s2 = int_to_ptr.vmem [resolvable:$true] %s145_s2 }
   0xf   :  { %v95_v5 = vmul.f32 %v169_v4, %v90_v3  ;;  %vm124_vm3 = vcmp.lt.s32.totalorder %v119_v21, 16 }
  0x11   :  { %v96_v6 = vmul.f32 %v95_v5, %v95_v5 }
  0x13   :  { %v98_v7 = vsel %vm97_vm0, %v96_v6, 0.0  ;;  %v126_v26 = vld [vmem:[#allocation2] sm:$0x1] }
  0x14   :  { %v99_v8 = vrot.slane %v98_v7, 4 }
  0x16   :  { %v100_v9 = vadd.f32 %v99_v8, %v98_v7 }
  0x18   :  { %v101_v10 = vrot.slane %v100_v9, 2 }
  0x1a   :  { %v102_v11 = vadd.f32 %v101_v10, %v100_v9 }
  0x1c   :  { %v103_v12 = vrot.slane %v102_v11, 1 }
  0x1e   :  { %v104_v13 = vadd.f32 %v103_v12, %v102_v11 }
  0x20   :  { %v105_v14 = vadd.f32 1e-15, %v104_v13 }
  0x22   :  { %170 = vrsqrt.f32 %v105_v14  ;;  %vm113_vm1 = vcmp.eq.f32.partialorder %v105_v14, inf  ;;  %v116_v23 = vand.u32 2147483648, %v105_v14  ;;  %vm115_vm2 = vcmp.eq.f32.partialorder %v105_v14, 0.0 }
  0x28   :  { %v171_v15 = vpop.eup %170 }
  0x29   :  { %v107_v16 = vmul.f32 %v171_v15, %v105_v14 }
  0x2b   :  { %v108_v17 = vmul.f32 %v171_v15, %v107_v16 }
  0x2d   :  { %v109_v19 = vmul.f32 0.5, %v108_v17 }
  0x2f   :  { %v110_v20 = vsub.f32 1.5, %v109_v19 }
  0x31   :  { %v111_v22 = vmul.f32 %v171_v15, %v110_v20 }
  0x33   :  { %v112_v24 = vmul.f32 %v111_v22, %v105_v14 }
  0x35   :  { %v114_v25 = vsel %vm113_vm1, %v105_v14, %v112_v24 }
  0x36   :  { %v117_v27 = vsel %vm115_vm2, %v116_v23, %v114_v25 }
  0x37   :  { %v125_v28 = vsel %vm124_vm3, %v117_v27, 0.0 }
  0x38   :  { %v127_v29 = vadd.f32 %v126_v26, %v125_v28 }
  0x3a   :  { %128 = vst [vmem:[#allocation2] sm:$0x1] %v127_v29 }
  0x41   :  { %v132_v30 = vld [vmem:[#allocation2] sm:$0x1] }
  0x42   :  { %v134_v31 = vsel %vm133_vm4, %v132_v30, 0.0 }
  0x43   :  { %135 = vadd.xlane.f32.xlu0 %v134_v31 }
  0xb6   :  { %v136_v32 = vpop.xlane.xlu0 %135 }
  0xb7   :  { %v137_v33 = vmul.f32 0.0625, %v136_v32 }
  0xb9   :  { %139 = vst.msk [vmem:[#allocation8] sm:$0x1] %vm138_vm5, %v137_v33 }
  0xba   :  { %150 = dma.vmem_to_hbm [thread:$0]  %s146_s2, 16, %s148_s25, [#allocation5]  }
  0xbb   :  { %248 = dma.done.wait [#allocation5], 16  }
  0xbc   :  { %249 = vsyncadd [#allocation5], 4294967280 }
  0xbd   :  { %155 = vsyncpa [#allocation4], 1 }
  0xbe   :  { %156 = vsyncpa [#allocation7], 1 }
  0xbf   :  { %157 = vsyncpa [#allocation5], 1 }

</bundles_post_ra>
